<compile_context>
chip_gen: v6e
topology: v6e:2x2x1
jax: 0.10.0
libtpu: 0.0.40
codegen_flags: <defaults>
</compile_context>

<pallas_src>
from functools import partial

import jax
import jax.numpy as jnp
from jax.experimental import pallas as pl
from jax.experimental.pallas import tpu as pltpu


# ----------------------------------------------------------------------------
# Fused kernel: pick_new_arm(t)  +  forward(observation)
# ----------------------------------------------------------------------------
def _ucb_step_kernel(means_ref, counts_ref, ub_in_ref, t_ref,
                     obs_ref, w_ref, b_ref,
                     act_ref, arm_ref, ub_out_ref, counts_out_ref):
    means = means_ref[...]            # (1, K) f32
    counts = counts_ref[...]          # (1, K) f32
    t = t_ref[0]                      # scalar (SMEM)

    is_zero = counts == 0.0
    any_zero = jnp.any(is_zero)

    # Guard the (discarded) zero-count branch against 0/0 and inf.
    safe_counts = jnp.where(is_zero, 1.0, counts)
    ub = (2.0 * jnp.log(t)) * pl.reciprocal(safe_counts, approx=False)

    # UCB branch: first-occurrence argmax(means + upper_bounds).
    scores = means + ub
    lane = jax.lax.broadcasted_iota(jnp.int32, scores.shape, 1)
    is_max = scores >= jnp.max(scores, axis=1, keepdims=True)
    ucb_arm = jnp.min(jnp.where(is_max, lane, jnp.int32(2 ** 30)))

    # Torch-verbatim unvisited-arm branch:
    #   torch.argmax(counts[counts == 0]) is the argmax of an all-zero
    #   filtered tensor -> index 0 of the filtered array, i.e. arm 0 is
    #   picked whenever any arm is still unvisited.
    arm_ref[0] = jnp.where(any_zero, jnp.int32(0), ucb_arm).astype(jnp.int32)
    arm = arm_ref[0]                  # read back as a clean SMEM scalar

    # pick_new_arm state updates (matches torch: upper_bounds only on the
    # no-zero branch; num_times_picked[arm] += 1 on both branches).
    ub_out_ref[...] = jnp.where(any_zero, ub_in_ref[...], ub)
    counts_out_ref[...] = counts + (lane == arm).astype(counts.dtype)

    # forward(): dispatch to the picked arm's linear head.  Dynamic index on
    # the (un-tiled) leading arm axis of the VMEM-resident weights.
    w = w_ref[arm]                    # (obs_dim, act_pad)
    bias = b_ref[arm]                 # (1, act_pad) -> broadcasts over batch
    # NOTE: on v6e/v7x with large real heads, cast obs/w to bf16 here and keep
    # preferred_element_type=f32 for ~3x MXU throughput (kept f32 at toy size).
    act_ref[...] = (
        jnp.dot(obs_ref[...], w, preferred_element_type=jnp.float32) + bias
    ).astype(act_ref.dtype)


# ----------------------------------------------------------------------------
# Standalone forward() kernel (currently_picked_arm already known)
# ----------------------------------------------------------------------------
def _forward_kernel(arm_ref, obs_ref, w_ref, b_ref, act_ref):
    arm = arm_ref[0]                  # SMEM scalar
    w = w_ref[arm]                    # (obs_dim, act_pad)
    bias = b_ref[arm]                 # (1, act_pad)
    act_ref[...] = (
        jnp.dot(obs_ref[...], w, preferred_element_type=jnp.float32) + bias
    ).astype(act_ref.dtype)


# ----------------------------------------------------------------------------
# Wrappers
# ----------------------------------------------------------------------------
def _round_up(x, m):
    return (x + m - 1) // m * m


def pad_arm_params(W, b, lane=128):
    """Pad the per-arm act dimension to a multiple of 128 lanes (done once)."""
    K, obs_dim, act_dim = W.shape
    act_pad = _round_up(act_dim, lane)
    W_pad = jnp.zeros((K, obs_dim, act_pad), W.dtype).at[:, :, :act_dim].set(W)
    b_pad = jnp.zeros((K, 1, act_pad), b.dtype).at[:, :, :act_dim].set(
        b.reshape(K, 1, act_dim))
    return W_pad, b_pad


_VMEM = pltpu.MemorySpace.VMEM
_SMEM = pltpu.MemorySpace.SMEM


@partial(jax.jit, static_argnames=("act_dim",))
def ucb_policy_step(observation, W_pad, b_pad, experimental_means,
                    num_times_picked, upper_bounds, t, *, act_dim):
    """Fused pick_new_arm(t) + forward(observation).

    Returns (action[B, act_dim], picked_arm, new_upper_bounds, new_counts).
    """
    B, _ = observation.shape
    K, _, act_pad = W_pad.shape

    means2d = experimental_means.reshape(1, K).astype(jnp.float32)
    counts2d = num_times_picked.reshape(1, K).astype(jnp.float32)
    ub2d = upper_bounds.reshape(1, K).astype(jnp.float32)
    t_arr = jnp.asarray(t, jnp.float32).reshape((1,))

    act, arm, new_ub, new_counts = pl.pallas_call(
        _ucb_step_kernel,
        out_shape=(
            jax.ShapeDtypeStruct((B, act_pad), jnp.float32),   # action
            jax.ShapeDtypeStruct((1,), jnp.int32),             # picked arm
            jax.ShapeDtypeStruct((1, K), jnp.float32),         # upper_bounds
            jax.ShapeDtypeStruct((1, K), jnp.float32),         # num_times_picked
        ),
        in_specs=[
            pl.BlockSpec(memory_space=_VMEM),   # experimental_means
            pl.BlockSpec(memory_space=_VMEM),   # num_times_picked
            pl.BlockSpec(memory_space=_VMEM),   # upper_bounds (aliased -> out 2)
            pl.BlockSpec(memory_space=_SMEM),   # t
            pl.BlockSpec(memory_space=_VMEM),   # observation
            pl.BlockSpec(memory_space=_VMEM),   # W_pad (whole tensor resident)
            pl.BlockSpec(memory_space=_VMEM),   # b_pad
        ],
        out_specs=(
            pl.BlockSpec(memory_space=_VMEM),
            pl.BlockSpec(memory_space=_SMEM),
            pl.BlockSpec(memory_space=_VMEM),
            pl.BlockSpec(memory_space=_VMEM),
        ),
        input_output_aliases={2: 2, 1: 3},      # ub -> ub_out, counts -> counts_out
    )(means2d, counts2d, ub2d, t_arr, observation, W_pad, b_pad)

    return act[:, :act_dim], arm[0], new_ub.reshape(K), new_counts.reshape(K)


@partial(jax.jit, static_argnames=("act_dim",))
def ucb_forward(observation, arm, W_pad, b_pad, *, act_dim):
    """forward(observation) with an already-selected currently_picked_arm."""
    B, _ = observation.shape
    K, _, act_pad = W_pad.shape
    arm1 = jnp.asarray(arm, jnp.int32).reshape((1,))

    act = pl.pallas_call(
        _forward_kernel,
        out_shape=jax.ShapeDtypeStruct((B, act_pad), jnp.float32),
        in_specs=[
            pl.BlockSpec(memory_space=_SMEM),   # arm index
            pl.BlockSpec(memory_space=_VMEM),   # observation
            pl.BlockSpec(memory_space=_VMEM),   # W_pad
            pl.BlockSpec(memory_space=_VMEM),   # b_pad
        ],
        out_specs=pl.BlockSpec(memory_space=_VMEM),
    )(arm1, observation, W_pad, b_pad)
    return act[:, :act_dim]


# ----------------------------------------------------------------------------
# Driver
# ----------------------------------------------------------------------------
if __name__ == "__main__":
    key = jax.random.PRNGKey(0)
    k_obs, k_w, k_b, k_means = jax.random.split(key, 4)

    B, obs_dim, act_dim, K = 8, 32, 16, 4

    observation = jax.random.normal(k_obs, (B, obs_dim), dtype=jnp.float32)
    W = jax.random.normal(k_w, (K, obs_dim, act_dim), dtype=jnp.float32) * 0.1
    b = jax.random.normal(k_b, (K, 1, act_dim), dtype=jnp.float32) * 0.1
    W_pad, b_pad = pad_arm_params(W, b)   # act_dim padded to 128 lanes

    # UCBPolicy parameter state (zeros at __init__, as in the nn.Module).
    experimental_means = jnp.zeros((K,), jnp.float32)
    num_times_picked = jnp.zeros((K,), jnp.float32)
    upper_bounds = jnp.zeros((K,), jnp.float32)

    # --- fused pick_new_arm(t=1) + forward(obs): unvisited arms -> arm 0 ----
    act0, arm0, upper_bounds, num_times_picked = ucb_policy_step(
        observation, W_pad, b_pad, experimental_means, num_times_picked,
        upper_bounds, 1.0, act_dim=act_dim)
    jax.block_until_ready(act0)

    assert int(arm0) == 0
    assert jnp.allclose(upper_bounds, 0.0)
    assert jnp.allclose(num_times_picked, jnp.array([1., 0., 0., 0.]))
    ref0 = observation @ W[0] + b[0]
    assert act0.shape == (B, act_dim)
    assert jnp.allclose(act0, ref0, atol=1e-5, rtol=1e-5)

    # --- standalone forward() with the currently picked arm -----------------
    out0 = ucb_forward(observation, arm0, W_pad, b_pad, act_dim=act_dim)
    out0 = jax.block_until_ready(out0)
    assert jnp.allclose(out0, ref0, atol=1e-5, rtol=1e-5)

    # --- fused step on the UCB branch (all arms visited) --------------------
    experimental_means = jax.random.normal(k_means, (K,), dtype=jnp.float32)
    counts_in = jnp.array([3.0, 1.0, 5.0, 2.0], jnp.float32)
    t = 10.0
    act1, arm1, upper_bounds, num_times_picked = ucb_policy_step(
        observation, W_pad, b_pad, experimental_means, counts_in,
        upper_bounds, t, act_dim=act_dim)
    jax.block_until_ready(act1)

    ref_ub = 2.0 * jnp.log(jnp.float32(t)) / counts_in
    ref_arm = int(jnp.argmax(experimental_means + ref_ub))
    ref_counts = counts_in.at[ref_arm].add(1.0)
    ref1 = observation @ W[ref_arm] + b[ref_arm]

    assert int(arm1) == ref_arm
    assert jnp.allclose(upper_bounds, ref_ub, atol=1e-5, rtol=1e-5)
    assert jnp.allclose(num_times_picked, ref_counts)
    assert jnp.allclose(act1, ref1, atol=1e-5, rtol=1e-5)

    print("KERNEL_OK")
</pallas_src>

<mosaic_0001>
module attributes {stable_mosaic.version = 11 : i64} {
  func.func @_ucb_step_kernel(%arg0: memref<1x4xf32, #tpu.memory_space<vmem>>, %arg1: memref<1x4xf32, #tpu.memory_space<vmem>>, %arg2: memref<1x4xf32, #tpu.memory_space<vmem>>, %arg3: memref<1xf32, #tpu.memory_space<smem>>, %arg4: memref<8x32xf32, #tpu.memory_space<vmem>>, %arg5: memref<4x32x128xf32, #tpu.memory_space<vmem>>, %arg6: memref<4x1x128xf32, #tpu.memory_space<vmem>>, %arg7: memref<8x128xf32, #tpu.memory_space<vmem>>, %arg8: memref<1xi32, #tpu.memory_space<smem>>, %arg9: memref<1x4xf32, #tpu.memory_space<vmem>>, %arg10: memref<1x4xf32, #tpu.memory_space<vmem>>) attributes {dimension_semantics = [], scalar_prefetch = 0 : i64, scratch_operands = 0 : i64, tpu.core_type = #tpu.core_type<tc>} {
    %c0 = arith.constant 0 : index
    %c0_0 = arith.constant 0 : index
    %0 = vector.load %arg0[%c0, %c0_0] : memref<1x4xf32, #tpu.memory_space<vmem>>, vector<1x4xf32>
    %c0_1 = arith.constant 0 : index
    %c0_2 = arith.constant 0 : index
    %1 = vector.load %arg1[%c0_1, %c0_2] : memref<1x4xf32, #tpu.memory_space<vmem>>, vector<1x4xf32>
    %c0_3 = arith.constant 0 : index
    %2 = memref.load %arg3[%c0_3] : memref<1xf32, #tpu.memory_space<smem>>
    %cst = arith.constant 0.000000e+00 : f32
    %3 = vector.broadcast %cst : f32 to vector<1x4xf32>
    %4 = arith.cmpf oeq, %1, %3 : vector<1x4xf32>
    %cst_4 = arith.constant 1.000000e+00 : f32
    %cst_5 = arith.constant 0.000000e+00 : f32
    %5 = vector.broadcast %cst_4 : f32 to vector<1x4xf32>
    %6 = vector.broadcast %cst_5 : f32 to vector<1x4xf32>
    %7 = arith.select %4, %5, %6 : vector<1x4xi1>, vector<1x4xf32>
    %8 = vector.shape_cast %7 : vector<1x4xf32> to vector<1x1x4xf32>
    %cst_6 = arith.constant dense<0xFF800000> : vector<1xf32>
    %9 = vector.multi_reduction <maximumf>, %8, %cst_6 [1, 2] : vector<1x1x4xf32> to vector<1xf32>
    %10 = vector.shape_cast %9 : vector<1xf32> to vector<1x1x1xf32>
    %11 = vector.extract %10[0, 0, 0] : f32 from vector<1x1x1xf32>
    %cst_7 = arith.constant 0.000000e+00 : f32
    %12 = arith.cmpf ogt, %11, %cst_7 : f32
    %cst_8 = arith.constant 1.000000e+00 : f32
    %13 = vector.broadcast %cst_8 : f32 to vector<1x4xf32>
    %14 = arith.select %4, %13, %1 : vector<1x4xi1>, vector<1x4xf32>
    %15 = math.log %2 : f32
    %cst_9 = arith.constant 2.000000e+00 : f32
    %16 = arith.mulf %cst_9, %15 : f32
    %17 = tpu.reciprocal %14 : vector<1x4xf32> -> vector<1x4xf32>
    %18 = vector.broadcast %16 : f32 to vector<1x4xf32>
    %19 = arith.mulf %18, %17 : vector<1x4xf32>
    %20 = arith.addf %0, %19 : vector<1x4xf32>
    %21 = tpu.iota {dimensions = array<i32: 1>} : vector<1x4xi32>
    %cst_10 = arith.constant dense<0xFF800000> : vector<1xf32>
    %22 = vector.multi_reduction <maximumf>, %20, %cst_10 [1] : vector<1x4xf32> to vector<1xf32>
    %23 = vector.shape_cast %22 : vector<1xf32> to vector<1x1xf32>
    %24 = vector.broadcast %23 : vector<1x1xf32> to vector<1x4xf32>
    %25 = arith.cmpf oge, %20, %24 : vector<1x4xf32>
    %c1073741824_i32 = arith.constant 1073741824 : i32
    %26 = vector.broadcast %c1073741824_i32 : i32 to vector<1x4xi32>
    %27 = arith.select %25, %21, %26 : vector<1x4xi1>, vector<1x4xi32>
    %28 = vector.shape_cast %27 : vector<1x4xi32> to vector<1x1x4xi32>
    %cst_11 = arith.constant dense<2147483647> : vector<1xi32>
    %29 = vector.multi_reduction <minsi>, %28, %cst_11 [1, 2] : vector<1x1x4xi32> to vector<1xi32>
    %30 = vector.shape_cast %29 : vector<1xi32> to vector<1x1x1xi32>
    %31 = vector.extract %30[0, 0, 0] : i32 from vector<1x1x1xi32>
    %c0_i32 = arith.constant 0 : i32
    %32 = arith.select %12, %c0_i32, %31 : i32
    %c0_12 = arith.constant 0 : index
    %33 = memref.load %arg8[%c0_12] : memref<1xi32, #tpu.memory_space<smem>>
    memref.store %32, %arg8[%c0_12] : memref<1xi32, #tpu.memory_space<smem>>
    %c0_13 = arith.constant 0 : index
    %34 = memref.load %arg8[%c0_13] : memref<1xi32, #tpu.memory_space<smem>>
    %c0_14 = arith.constant 0 : index
    %c0_15 = arith.constant 0 : index
    %35 = vector.load %arg2[%c0_14, %c0_15] : memref<1x4xf32, #tpu.memory_space<vmem>>, vector<1x4xf32>
    %36 = arith.select %12, %35, %19 : vector<1x4xf32>
    %c0_16 = arith.constant 0 : index
    %c0_17 = arith.constant 0 : index
    %37 = vector.load %arg9[%c0_16, %c0_17] : memref<1x4xf32, #tpu.memory_space<vmem>>, vector<1x4xf32>
    tpu.vector_store %arg9[%c0_16, %c0_17], %36 {strides = array<i32>} : memref<1x4xf32, #tpu.memory_space<vmem>>, vector<1x4xf32>,
    %38 = vector.broadcast %34 : i32 to vector<1x4xi32>
    %39 = arith.cmpi eq, %21, %38 : vector<1x4xi32>
    %40 = arith.extui %39 : vector<1x4xi1> to vector<1x4xi32>
    %41 = arith.sitofp %40 : vector<1x4xi32> to vector<1x4xf32>
    %42 = arith.addf %1, %41 : vector<1x4xf32>
    %c0_18 = arith.constant 0 : index
    %c0_19 = arith.constant 0 : index
    %43 = vector.load %arg10[%c0_18, %c0_19] : memref<1x4xf32, #tpu.memory_space<vmem>>, vector<1x4xf32>
    tpu.vector_store %arg10[%c0_18, %c0_19], %42 {strides = array<i32>} : memref<1x4xf32, #tpu.memory_space<vmem>>, vector<1x4xf32>,
    %44 = arith.index_cast %34 : i32 to index
    %c0_20 = arith.constant 0 : index
    %c0_21 = arith.constant 0 : index
    %45 = vector.load %arg5[%44, %c0_20, %c0_21] : memref<4x32x128xf32, #tpu.memory_space<vmem>>, vector<1x32x128xf32>
    %46 = vector.shape_cast %45 : vector<1x32x128xf32> to vector<32x128xf32>
    %47 = arith.index_cast %34 : i32 to index
    %c0_22 = arith.constant 0 : index
    %c0_23 = arith.constant 0 : index
    %48 = vector.load %arg6[%47, %c0_22, %c0_23] : memref<4x1x128xf32, #tpu.memory_space<vmem>>, vector<1x1x128xf32>
    %49 = vector.shape_cast %48 : vector<1x1x128xf32> to vector<1x128xf32>
    %c0_24 = arith.constant 0 : index
    %c0_25 = arith.constant 0 : index
    %50 = vector.load %arg4[%c0_24, %c0_25] : memref<8x32xf32, #tpu.memory_space<vmem>>, vector<8x32xf32>
    %cst_26 = arith.constant dense<0.000000e+00> : vector<8x128xf32>
    %51 = tpu.matmul %50, %46, %cst_26 {dimension_numbers = #tpu.dot_dimension_numbers<[1], [0], [0], [1], [0, 0, 1, 1], [], []>} : vector<8x32xf32>, vector<32x128xf32>, vector<8x128xf32> -> vector<8x128xf32>
    %52 = vector.broadcast %49 : vector<1x128xf32> to vector<8x128xf32>
    %53 = arith.addf %51, %52 : vector<8x128xf32>
    %c0_27 = arith.constant 0 : index
    %c0_28 = arith.constant 0 : index
    %54 = vector.load %arg7[%c0_27, %c0_28] : memref<8x128xf32, #tpu.memory_space<vmem>>, vector<8x128xf32>
    tpu.vector_store %arg7[%c0_27, %c0_28], %53 {strides = array<i32>} : memref<8x128xf32, #tpu.memory_space<vmem>>, vector<8x128xf32>,
    return
  }
}

</mosaic_0001>

<bundles_post_ra>
// kernel: ucb_policy_step.1
= control target key start
LH: loop header
LB: loop body
LE: loop exit
PB: predicated region body
PF: predicated region fallthrough
CT: control target
= control target key end

     0   :  { %17 = vsyncpa [#allocation4], 0  ;;  %s465_s0 = inlined_call_operand.vmem [shape: f32[1,4], index: 0, kind: input, shape index: {}]   ;;  %s466_s1 = inlined_call_operand.vmem [shape: f32[1,4], index: 1, kind: input, shape index: {}, may-alias: {1,10}]   ;;  %s467_s2 = inlined_call_operand.vmem [shape: f32[1,4], index: 2, kind: input, shape index: {}, may-alias: {2,9}]   ;;  %s468_s3 = inlined_call_operand.<no memory space> [shape: f32[1], index: 3, kind: input, shape index: {}]   ;;  %s469_s4 = inlined_call_operand.vmem [shape: f32[8,32], index: 4, kind: input, shape index: {}]   ;;  %s470_s5 = inlined_call_operand.hbm [shape: f32[4,32,128], index: 5, kind: input, shape index: {}]   ;;  %s471_s6 = inlined_call_operand.vmem [shape: f32[4,1,128], index: 6, kind: input, shape index: {}]   ;;  %s472_s7 = inlined_call_operand.hbm [shape: f32[8,128], index: 7, kind: output, shape index: {0}]   ;;  %s473_s8 = inlined_call_operand.hbm [shape: s32[1], index: 8, kind: output, shape index: {1}]   ;;  %s474_s9 = inlined_call_operand.vmem [shape: f32[1,4], index: 9, kind: output, shape index: {2}, may-alias: {2,9}]   ;;  %s475_s10 = inlined_call_operand.vmem [shape: f32[1,4], index: 10, kind: output, shape index: {3}, may-alias: {1,10}]  }
   0x1   :  { %18 = vsyncpa [#allocation5], 0 }
   0x2   :  { %19 = vsyncpa [#allocation6], 0  ;;  %s342_s13 = smov [#allocation3]  }
   0x3   :  { %s35_s14 = sshll.u32 %s342_s13, 4  ;;  %s36_s14 = int_to_ptr.vmem [resolvable:$true] %s35_s14 }
   0x4   :  { %s296_s15 = scalar_lea.vmem %s36_s14, 2048  ;;  %p301_p1 = scmp.lt.s32.totalorder %s36_s14, %s36_s14 }
   0x5   :  { %p297_p0 = scmp.ne.s32.totalorder %s36_s14, %s296_s15  ;;  %p302_p2 = scmp.lt.s32.totalorder %s296_s15, %s296_s15 }
   0x7   :  { %p303_p3 = por %p302_p2, %p301_p1 }
   0x9   :  { %p304_p4 = pnand %p303_p3, %p297_p0 }
   0xb   :  { %307 = shalt.err (!%p304_p4)
}
   0xc   :  { %s343_s16 = smov 128   ;;  %s344_s17 = smov 8  }
   0xd   :  { %41 = dma.hbm_to_vmem [thread:$0]  %s470_s5, 2048, %s36_s14, [#allocation4], %s343_s16, %s343_s16, %s344_s17  }
   0xe   :  { %336 = dma.done.wait [#allocation4], 2048  }
   0xf   :  { %337 = vsyncadd [#allocation4], 4294965248  ;;  %v345_v0 = vmov 0.0   ;;  %v411_v1 = vld [vmem:[%s466_s1] sm:$0x1]  ;;  %vm52_vm0 = vcmask 24576   ;;  %v65_v4 = vstv %s468_s3  ;;  %v74_v24 = vlaneseq }
  0x10   :  { %260 = vmatprep.subr.mxu0 %v345_v0  ;;  %vm50_vm1 = vcmp.eq.f32.partialorder %v411_v1, 0.0  ;;  %284 = vlog2.f32 %v65_v4  ;;  %v110_v17 = vld [vmem:[%s467_s2] sm:$0x1]  ;;  %vm346_vm5 = vmmov 0   ;;  %vm137_vm10 = vcmask 261120   ;;  %s347_s15 = smov [#allocation8]  }
  0x11   :  { %v51_v2 = vsel %vm50_vm1, 1.0, %v345_v0  ;;  %v64_v14 = vsel %vm50_vm1, 1.0, %v411_v1  ;;  %v47_v18 = vld [vmem:[%s465_s0] sm:$0x1]  ;;  %v75_v25 = vand.u32 127, %v74_v24  ;;  %268 = vmatprep.mubr.msk.f32.mxu0 %vm346_vm5, %v345_v0  ;;  %s348_s20 = smov [#allocation7]  }
  0x12   :  { %v53_v3 = vsel %vm52_vm0, %v51_v2, -inf  ;;  %286 = vrcp.f32 %v64_v14  ;;  %v130_v52 = vld [vmem:[%s469_s4] sm:$0xff]  ;;  %s218_s21 = sshll.u32 %s348_s20, 4  ;;  %s219_s21 = int_to_ptr.vmem [resolvable:$true] %s218_s21 }
  0x13   :  { %54 = vmax.xlane.f32.xlu0 %v53_v3  ;;  %s316_s4 = scalar_lea.vmem %s219_s21, 128  ;;  %p321_p7 = scmp.lt.s32.totalorder %s219_s21, %s219_s21 }
  0x14   :  { %p317_p6 = scmp.ne.s32.totalorder %s219_s21, %s316_s4  ;;  %p322_p8 = scmp.lt.s32.totalorder %s316_s4, %s316_s4 }
  0x16   :  { %p323_p9 = por %p322_p8, %p321_p7 }
  0x18   :  { %p324_p10 = pnand %p323_p9, %p317_p6 }
  0x1d   :  { %v285_v9 = vpop.eup %284 }
  0x1e   :  { %v67_v12 = vmul.f32 0.6931472, %v285_v9 }
  0x1f   :  { %v287_v15 = vpop.eup %286 }
  0x9c   :  { %v55_v5 = vpop.xlane.xlu0 %54 }
  0x9d   :  { %v56_v6 = vrot.slane %v55_v5, 4 }
  0x9f   :  { %v57_v7 = vmax.f32 %v55_v5, %v56_v6 }
  0xa1   :  { %v58_v8 = vrot.slane %v57_v7, 2 }
  0xa3   :  { %v59_v10 = vmax.f32 %v57_v7, %v58_v8 }
  0xa5   :  { %v60_v11 = vrot.slane %v59_v10, 1 }
  0xa7   :  { %v61_v13 = vmax.f32 %v59_v10, %v60_v11 }
  0xa9   :  { %271 = vpush %v61_v13 }
  0xaa   :  { %273 = vpush %v67_v12 }
  0xda   :  { %s424_s1 = spop %271 }
  0xdb   :  { %p63_p5 = scmp.gt.f32.partialorder %s424_s1, 0.0  ;;  %s274_s3 = spop %273 }
  0xdc   :  { %s69_s23 = smul.f32 2.0, %s274_s3 }
  0xdd   :  { %s111_s24 = scalar_select %p63_p5, 1, 0 }
  0xde   :  { %v71_v16 = vstv %s69_s23 }
  0xdf   :  { %v112_v19 = vstv %s111_s24  ;;  %v72_v20 = vmul.f32 %v287_v15, %v71_v16 }
  0xe0   :  { %vm113_vm2 = vcmp.eq.s32.totalorder %v112_v19, 1 }
  0xe1   :  { %v114_v21 = vsel %vm113_vm2, %v110_v17, %v72_v20  ;;  %v73_v22 = vadd.f32 %v72_v20, %v47_v18 }
  0xe2   :  { %115 = vst.msk [vmem:[%s474_s9] sm:$0x1] %vm52_vm0, %v114_v21 }
  0xe3   :  { %v76_v23 = vsel %vm52_vm0, %v73_v22, -inf }
  0xe4   :  { %77 = vmax.xlane.f32.xlu0 %v76_v23 }
 0x16d   :  { %v78_v26 = vpop.xlane.xlu0 %77 }
 0x16e   :  { %vm79_vm3 = vcmp.ge.f32.partialorder %v73_v22, %v78_v26 }
 0x16f   :  { %v80_v27 = vsel %vm79_vm3, %v75_v25, 1073741824 }
 0x170   :  { %v81_v28 = vsel %vm52_vm0, %v80_v27, 2147483647 }
 0x171   :  { %v83_v29 = vshra.s32 %v81_v28, 16  ;;  %v82_v31 = vand.u32 65535, %v81_v28 }
 0x173   :  { %v85_v30 = vcvt.s32.f32 %v83_v29  ;;  %v84_v33 = vcvt.s32.f32 %v82_v31 }
 0x175   :  { %86 = vmin.xlane.f32.xlu1 %v85_v30 }
 0x1fe   :  { %v87_v32 = vpop.xlane.xlu1 %86 }
 0x1ff   :  { %vm88_vm4 = vcmp.eq.f32.partialorder %v85_v30, %v87_v32  ;;  %v93_v35 = vcvt.f32.s32 %v87_v32 }
 0x200   :  { %v89_v34 = vsel %vm88_vm4, %v84_v33, inf }
 0x201   :  { %90 = vmin.xlane.f32.xlu1 %v89_v34  ;;  %v94_v37 = vshll.u32 %v93_v35, 16 }
 0x28a   :  { %v91_v36 = vpop.xlane.xlu1 %90 }
 0x28b   :  { %v92_v38 = vcvt.f32.s32 %v91_v36 }
 0x28d   :  { %v95_v39 = vadd.s32 %v94_v37, %v92_v38 }
 0x28f   :  { %v96_v40 = vrot.slane %v95_v39, 4 }
 0x291   :  { %vm97_vm6 = vcmp.lt.s32.totalorder %v95_v39, %v96_v40 }
 0x292   :  { %v98_v41 = vsel %vm97_vm6, %v95_v39, %v96_v40 }
 0x293   :  { %v99_v42 = vrot.slane %v98_v41, 2 }
 0x295   :  { %vm100_vm7 = vcmp.lt.s32.totalorder %v98_v41, %v99_v42 }
 0x296   :  { %v101_v43 = vsel %vm100_vm7, %v98_v41, %v99_v42 }
 0x297   :  { %v102_v44 = vrot.slane %v101_v43, 1 }
 0x299   :  { %vm103_vm8 = vcmp.lt.s32.totalorder %v101_v43, %v102_v44 }
 0x29a   :  { %v104_v45 = vsel %vm103_vm8, %v101_v43, %v102_v44 }
 0x29b   :  { %275 = vpush %v104_v45 }
 0x2cc   :  { %s276_s0 = spop %275 }
 0x2cd   :  { %s477_s0 = smov (%p63_p5, %s276_s0), 0 }
 0x2ce   :  { %108 = sst [smem:[#allocation8]] %s477_s0  ;;  %v116_v46 = vstv %s477_s0  ;;  %s252_s2 = sshll.u32 %s477_s0, 5 }
 0x2cf   :  { %vm117_vm9 = vcmp.eq.s32.totalorder %v75_v25, %v116_v46  ;;  %s123_s9 = scalar_lea.vmem [#allocation3], %s252_s2  ;;  %s128_s19 = scalar_lea.vmem %s471_s6, %s477_s0 }
 0x2d0   :  { %v251_v47 = vsel %vm117_vm9, 1.0, %v345_v0  ;;  %v127_v48 = vld [vmem:[%s123_s9 + $0x18] sm:$0xff]  ;;  %v126_v50 = vld [vmem:[%s123_s9 + $0x10] sm:$0xff]  ;;  %v125_v51 = vld [vmem:[%s123_s9 + $0x8] sm:$0xff]  ;;  %229 = dma.smem_to_hbm %s347_s15, 16, %s473_s8, [#allocation6]  }
 0x2d1   :  { %v120_v49 = vadd.f32 %v251_v47, %v411_v1  ;;  %261 = vmatpush3.msra.mxu0 %v127_v48  ;;  %v124_v53 = vld [vmem:[%s123_s9] sm:$0xff] }
 0x2d2   :  { %262 = vmatprep.subr.mxu0 %v345_v0  ;;  %v253_v54 = vld [vmem:[%s128_s19] ss:$0 sm:$0xff] }
 0x2d3   :  { %121 = vst.msk [vmem:[%s475_s10] sm:$0x1] %vm52_vm0, %v120_v49  ;;  %263 = vmatpush3.msra.mxu0 %v126_v50 }
 0x2d4   :  { %264 = vmatprep.subr.mxu0 %v345_v0 }
 0x2d5   :  { %265 = vmatpush3.msra.mxu0 %v125_v51 }
 0x2d6   :  { %266 = vmatprep.subr.mxu0 %v345_v0 }
 0x2d7   :  { %267 = vmatpush3.msra.mxu0 %v124_v53 }
 0x2d8   :  { %269 = vmatmul.mubr.msk.f32.vlgmr.msra.gmra.mxu0 %vm137_vm10, %v130_v52 }
 0x398   :  { %v207_v55 = vpop.f32.mrf.mxu0 }
 0x399   :  { %v208_v56 = vadd.f32 %v253_v54, %v207_v55 }
 0x39a   :  { %v270_v57 = vpop.f32.mrf.mxu0 }
 0x39b   :  { %211 = vst [vmem:[#allocation7] sm:$0xff] %v208_v56 }
 0x39c   :  { %327 = shalt.err (!%p324_p10)
}
 0x39d   :  { %221 = dma.vmem_to_hbm [thread:$0]  %s219_s21, 128, %s472_s7, [#allocation5]  }
 0x39e   :  { %338 = dma.done.wait [#allocation5], 128  }
 0x39f   :  { %339 = vsyncadd [#allocation5], 4294967168 }
 0x3a0   :  { %340 = dma.done.wait [#allocation6], 16  }
 0x3a1   :  { %341 = vsyncadd [#allocation6], 4294967280 }
 0x3a2   :  { %244 = sfence }
 0x3a3   :  { %245 = vsyncpa [#allocation4], 1 }
 0x3a4   :  { %246 = vsyncpa [#allocation5], 1 }
 0x3a5   :  { %247 = vsyncpa [#allocation6], 1 }

</bundles_post_ra>
